<compile_context>
chip_gen: v6e
topology: v6e:2x2x1
jax: 0.10.0
libtpu: 0.0.40
codegen_flags: <defaults>
</compile_context>

<pallas_src>
import functools

import jax
import jax.numpy as jnp
from jax.experimental import pallas as pl
from jax.experimental.pallas import tpu as pltpu

LANE = 128
SUBLANE = 8


def _round_up(x, m):
    return ((x + m - 1) // m) * m


# ----------------------------------------------------------------------------- kernel
def make_qnet_kernel(num_hidden):
    """Kernel body for an MLP with `num_hidden` Linear+ReLU layers and a Linear header.

    Ref order: x, (w, b) * (num_hidden + 1), out.
    x arrives as f32 (cast to bf16 in-kernel); weights are bf16; biases are f32;
    accumulation is f32 on the MXU.
    """
    def kernel(*refs):
        x_ref, out_ref = refs[0], refs[-1]
        p = refs[1:-1]
        h = x_ref[...].astype(jnp.bfloat16)                # in-kernel cast, ~free
        for l in range(num_hidden):                        # static Python unroll
            w_ref, b_ref = p[2 * l], p[2 * l + 1]
            a = jnp.dot(h, w_ref[...], preferred_element_type=jnp.float32)
            a = jnp.maximum(a + b_ref[...], 0.0)           # f32 bias add + ReLU (v5e-safe)
            h = a.astype(jnp.bfloat16)                     # back to bf16 for next MXU pass
        wh_ref, bh_ref = p[-2], p[-1]
        o = jnp.dot(h, wh_ref[...], preferred_element_type=jnp.float32)
        out_ref[...] = (o + bh_ref[...]).astype(out_ref.dtype)   # lane-dense 128-wide store
    return kernel


# ------------------------------------------------------------------- one-time param prep
def prepare_params(params):
    """One-time preparation of QNet params for the kernel (hoisted out of the call path).

    Every layer's output width is zero-padded up to a multiple of 128 lanes; the next
    layer's input rows are padded to match.  Padded weight columns/rows AND padded bias
    entries are zero, so the padded activation lanes stay exactly zero through ReLU and
    the result is numerically identical to the unpadded network.
    Weights are cast to bf16, biases to f32, once.
    """
    num_hidden = len(params) - 1
    state_dim = params[0][0].shape[0]
    action_dim = params[-1][0].shape[1]

    flat = []
    prev_out = state_dim                      # first matmul's K (state_dim) stays unpadded
    for (w, b) in params:
        k, n = w.shape
        n_pad = _round_up(n, LANE)
        w_p = jnp.zeros((prev_out, n_pad), jnp.bfloat16).at[:k, :n].set(
            w.astype(jnp.bfloat16))
        b_p = jnp.zeros((1, n_pad), jnp.float32).at[:, :n].set(b.astype(jnp.float32))
        flat.append(w_p)
        flat.append(b_p)
        prev_out = n_pad

    meta = dict(num_hidden=num_hidden, state_dim=state_dim,
                action_dim=action_dim, n_out_pad=prev_out)
    return flat, meta


def default_num_batch_tiles():
    """1 grid step on single-TensorCore chips (v5e/v6e); 2 parallel tiles on v7x so
    megacore sharding keeps both TensorCores busy."""
    try:
        kind = (jax.devices()[0].device_kind or "").lower()
        if "v7" in kind:
            return 2
    except Exception:
        pass
    return 1


# --------------------------------------------------------------------------- forward
def qnet_forward(x, flat_params, *, meta, num_batch_tiles=1):
    """x: (B, state_dim) float32.  flat_params/meta: from prepare_params()."""
    B, state_dim = x.shape
    assert state_dim == meta["state_dim"]
    num_hidden = meta["num_hidden"]
    action_dim = meta["action_dim"]
    n_out_pad = meta["n_out_pad"]

    # Ragged batch: pad rows up so each of the `num_batch_tiles` tiles is sublane-aligned.
    b_pad = _round_up(max(B, SUBLANE), SUBLANE * num_batch_tiles)
    block_b = b_pad // num_batch_tiles
    xp = jnp.pad(x, ((0, b_pad - B), (0, 0))) if b_pad != B else x

    def resident(a):  # whole array, DMA'd once, resident in VMEM across grid steps
        return pl.BlockSpec(a.shape, lambda i: (0,) * a.ndim)

    # Advisory cost hint for XLA scheduling of this tiny custom call.
    flops = 0
    bytes_accessed = xp.size * 4 + b_pad * n_out_pad * 4
    for w in flat_params[0::2]:
        flops += 2 * b_pad * w.shape[0] * w.shape[1]
        bytes_accessed += w.size * 2
    for b in flat_params[1::2]:
        bytes_accessed += b.size * 4
    cost = pl.CostEstimate(flops=flops, transcendentals=0,
                           bytes_accessed=bytes_accessed)

    out_padded = pl.pallas_call(
        make_qnet_kernel(num_hidden),
        out_shape=jax.ShapeDtypeStruct((b_pad, n_out_pad), jnp.float32),
        grid=(num_batch_tiles,),
        in_specs=[pl.BlockSpec((block_b, state_dim), lambda i: (i, 0))]
                 + [resident(a) for a in flat_params],
        out_specs=pl.BlockSpec((block_b, n_out_pad), lambda i: (i, 0)),
        compiler_params=pltpu.CompilerParams(
            dimension_semantics=("parallel",)),   # v7x: shard batch tiles across TCs
        cost_estimate=cost,
    )(xp, *flat_params)

    return out_padded[:B, :action_dim]


# -------------------------------------------------------------------- init & reference
def init_qnet_params(key, state_dim, hidden_layers_dim, action_dim):
    """PyTorch nn.Linear-style init, stored as (in, out) weights and (1, out) biases."""
    dims = [state_dim] + list(hidden_layers_dim) + [action_dim]
    params = []
    for i in range(len(dims) - 1):
        fan_in, fan_out = dims[i], dims[i + 1]
        key, kw, kb = jax.random.split(key, 3)
        bound = 1.0 / float(fan_in) ** 0.5
        w = jax.random.uniform(kw, (fan_in, fan_out), jnp.float32, -bound, bound)
        b = jax.random.uniform(kb, (1, fan_out), jnp.float32, -bound, bound)
        params.append((w, b))
    return params


def qnet_reference(x, params, matmul_dtype=jnp.float32):
    """Pure-JAX reference, optionally emulating the kernel's bf16 matmul inputs."""
    h = x.astype(matmul_dtype)
    for w, b in params[:-1]:
        a = jnp.dot(h, w.astype(matmul_dtype), preferred_element_type=jnp.float32)
        h = jnp.maximum(a + b, 0.0).astype(matmul_dtype)
    wh, bh = params[-1]
    return jnp.dot(h, wh.astype(matmul_dtype),
                   preferred_element_type=jnp.float32) + bh


# --------------------------------------------------------------------------------- main
if __name__ == "__main__":
    # Pendulum-v0 DDQN: state_dim=3, hidden [32, 32], discretized action_dim=11.
    state_dim, hidden_layers_dim, action_dim = 3, [32, 32], 11
    batch = 500            # replay-buffer-sized batch; deliberately NOT a tile multiple

    key = jax.random.PRNGKey(0)
    key, kx = jax.random.split(key)
    x = jax.random.normal(kx, (batch, state_dim), dtype=jnp.float32)
    params = init_qnet_params(key, state_dim, hidden_layers_dim, action_dim)

    # One-time param prep (pad + bf16 cast) hoisted out of the per-call path.
    flat_params, meta = prepare_params(params)
    n_tiles = default_num_batch_tiles()

    fwd = jax.jit(functools.partial(qnet_forward, meta=meta, num_batch_tiles=n_tiles))
    out = jax.block_until_ready(fwd(x, flat_params))
    assert out.shape == (batch, action_dim)

    # Tight check vs. a reference doing the same bf16-input / f32-accumulate matmuls
    # (zero-padding of hidden widths is numerically exact, so this should match closely).
    ref_bf16 = qnet_reference(x, params, matmul_dtype=jnp.bfloat16)
    assert jnp.allclose(out, ref_bf16, atol=1e-3, rtol=1e-3), "mismatch vs bf16 reference"

    # Loose sanity check vs. the full-f32 reference (bf16 matmul inputs => small drift).
    ref_f32 = qnet_reference(x, params, matmul_dtype=jnp.float32)
    assert jnp.allclose(out, ref_f32, atol=5e-2, rtol=5e-2), "mismatch vs f32 reference"

    print("KERNEL_OK")
</pallas_src>

<mosaic_0001>
module attributes {stable_mosaic.version = 11 : i64} {
  func.func @kernel(%arg0: i32, %arg1: memref<504x3xf32, #tpu.memory_space<vmem>>, %arg2: memref<3x128xbf16, #tpu.memory_space<vmem>>, %arg3: memref<1x128xf32, #tpu.memory_space<vmem>>, %arg4: memref<128x128xbf16, #tpu.memory_space<vmem>>, %arg5: memref<1x128xf32, #tpu.memory_space<vmem>>, %arg6: memref<128x128xbf16, #tpu.memory_space<vmem>>, %arg7: memref<1x128xf32, #tpu.memory_space<vmem>>, %arg8: memref<504x128xf32, #tpu.memory_space<vmem>>) attributes {dimension_semantics = [#tpu.dimension_semantics<parallel>], iteration_bounds = array<i64: 1>, scalar_prefetch = 0 : i64, scratch_operands = 0 : i64, tpu.core_type = #tpu.core_type<tc>, window_params = [{transform_indices = @transform_0, window_bounds = array<i64: 504, 3>}, {pipeline_mode = #tpu.pipeline_mode<synchronous>, transform_indices = @transform_1, window_bounds = array<i64: 3, 128>}, {pipeline_mode = #tpu.pipeline_mode<synchronous>, transform_indices = @transform_2, window_bounds = array<i64: 1, 128>}, {pipeline_mode = #tpu.pipeline_mode<synchronous>, transform_indices = @transform_3, window_bounds = array<i64: 128, 128>}, {pipeline_mode = #tpu.pipeline_mode<synchronous>, transform_indices = @transform_4, window_bounds = array<i64: 1, 128>}, {pipeline_mode = #tpu.pipeline_mode<synchronous>, transform_indices = @transform_5, window_bounds = array<i64: 128, 128>}, {pipeline_mode = #tpu.pipeline_mode<synchronous>, transform_indices = @transform_6, window_bounds = array<i64: 1, 128>}, {transform_indices = @transform_7, window_bounds = array<i64: 504, 128>}]} {
    %c0 = arith.constant 0 : index
    %c0_0 = arith.constant 0 : index
    %0 = vector.load %arg1[%c0, %c0_0] : memref<504x3xf32, #tpu.memory_space<vmem>>, vector<504x3xf32>
    %1 = arith.truncf %0 : vector<504x3xf32> to vector<504x3xbf16>
    %c0_1 = arith.constant 0 : index
    %c0_2 = arith.constant 0 : index
    %2 = vector.load %arg2[%c0_1, %c0_2] : memref<3x128xbf16, #tpu.memory_space<vmem>>, vector<3x128xbf16>
    %cst = arith.constant dense<0.000000e+00> : vector<504x128xf32>
    %3 = tpu.matmul %1, %2, %cst {dimension_numbers = #tpu.dot_dimension_numbers<[1], [0], [0], [1], [0, 0, 1, 1], [], []>} : vector<504x3xbf16>, vector<3x128xbf16>, vector<504x128xf32> -> vector<504x128xf32>
    %c0_3 = arith.constant 0 : index
    %c0_4 = arith.constant 0 : index
    %4 = vector.load %arg3[%c0_3, %c0_4] : memref<1x128xf32, #tpu.memory_space<vmem>>, vector<1x128xf32>
    %5 = vector.broadcast %4 : vector<1x128xf32> to vector<504x128xf32>
    %6 = arith.addf %3, %5 : vector<504x128xf32>
    %cst_5 = arith.constant 0.000000e+00 : f32
    %7 = vector.broadcast %cst_5 : f32 to vector<504x128xf32>
    %8 = arith.maximumf %6, %7 : vector<504x128xf32>
    %9 = arith.truncf %8 : vector<504x128xf32> to vector<504x128xbf16>
    %c0_6 = arith.constant 0 : index
    %c0_7 = arith.constant 0 : index
    %10 = vector.load %arg4[%c0_6, %c0_7] : memref<128x128xbf16, #tpu.memory_space<vmem>>, vector<128x128xbf16>
    %cst_8 = arith.constant dense<0.000000e+00> : vector<504x128xf32>
    %11 = tpu.matmul %9, %10, %cst_8 {dimension_numbers = #tpu.dot_dimension_numbers<[1], [0], [0], [1], [0, 0, 1, 1], [], []>} : vector<504x128xbf16>, vector<128x128xbf16>, vector<504x128xf32> -> vector<504x128xf32>
    %c0_9 = arith.constant 0 : index
    %c0_10 = arith.constant 0 : index
    %12 = vector.load %arg5[%c0_9, %c0_10] : memref<1x128xf32, #tpu.memory_space<vmem>>, vector<1x128xf32>
    %13 = vector.broadcast %12 : vector<1x128xf32> to vector<504x128xf32>
    %14 = arith.addf %11, %13 : vector<504x128xf32>
    %cst_11 = arith.constant 0.000000e+00 : f32
    %15 = vector.broadcast %cst_11 : f32 to vector<504x128xf32>
    %16 = arith.maximumf %14, %15 : vector<504x128xf32>
    %17 = arith.truncf %16 : vector<504x128xf32> to vector<504x128xbf16>
    %c0_12 = arith.constant 0 : index
    %c0_13 = arith.constant 0 : index
    %18 = vector.load %arg6[%c0_12, %c0_13] : memref<128x128xbf16, #tpu.memory_space<vmem>>, vector<128x128xbf16>
    %cst_14 = arith.constant dense<0.000000e+00> : vector<504x128xf32>
    %19 = tpu.matmul %17, %18, %cst_14 {dimension_numbers = #tpu.dot_dimension_numbers<[1], [0], [0], [1], [0, 0, 1, 1], [], []>} : vector<504x128xbf16>, vector<128x128xbf16>, vector<504x128xf32> -> vector<504x128xf32>
    %c0_15 = arith.constant 0 : index
    %c0_16 = arith.constant 0 : index
    %20 = vector.load %arg7[%c0_15, %c0_16] : memref<1x128xf32, #tpu.memory_space<vmem>>, vector<1x128xf32>
    %21 = vector.broadcast %20 : vector<1x128xf32> to vector<504x128xf32>
    %22 = arith.addf %19, %21 : vector<504x128xf32>
    %c0_17 = arith.constant 0 : index
    %c0_18 = arith.constant 0 : index
    %23 = vector.load %arg8[%c0_17, %c0_18] : memref<504x128xf32, #tpu.memory_space<vmem>>, vector<504x128xf32>
    tpu.vector_store %arg8[%c0_17, %c0_18], %22 {strides = array<i32>} : memref<504x128xf32, #tpu.memory_space<vmem>>, vector<504x128xf32>,
    return
  }
  func.func @transform_0(%arg0: i32) -> (i32, i32) {
    %c0_i32 = arith.constant 0 : i32
    %c0_i32_0 = arith.constant 0 : i32
    return %arg0, %c0_i32 : i32, i32
  }
  func.func @transform_1(%arg0: i32) -> (i32, i32) {
    %c0_i32 = arith.constant 0 : i32
    %c0_i32_0 = arith.constant 0 : i32
    %c0_i32_1 = arith.constant 0 : i32
    return %c0_i32, %c0_i32_0 : i32, i32
  }
  func.func @transform_2(%arg0: i32) -> (i32, i32) {
    %c0_i32 = arith.constant 0 : i32
    %c0_i32_0 = arith.constant 0 : i32
    %c0_i32_1 = arith.constant 0 : i32
    return %c0_i32, %c0_i32_0 : i32, i32
  }
  func.func @transform_3(%arg0: i32) -> (i32, i32) {
    %c0_i32 = arith.constant 0 : i32
    %c0_i32_0 = arith.constant 0 : i32
    %c0_i32_1 = arith.constant 0 : i32
    return %c0_i32, %c0_i32_0 : i32, i32
  }
  func.func @transform_4(%arg0: i32) -> (i32, i32) {
    %c0_i32 = arith.constant 0 : i32
    %c0_i32_0 = arith.constant 0 : i32
    %c0_i32_1 = arith.constant 0 : i32
    return %c0_i32, %c0_i32_0 : i32, i32
  }
  func.func @transform_5(%arg0: i32) -> (i32, i32) {
    %c0_i32 = arith.constant 0 : i32
    %c0_i32_0 = arith.constant 0 : i32
    %c0_i32_1 = arith.constant 0 : i32
    return %c0_i32, %c0_i32_0 : i32, i32
  }
  func.func @transform_6(%arg0: i32) -> (i32, i32) {
    %c0_i32 = arith.constant 0 : i32
    %c0_i32_0 = arith.constant 0 : i32
    %c0_i32_1 = arith.constant 0 : i32
    return %c0_i32, %c0_i32_0 : i32, i32
  }
  func.func @transform_7(%arg0: i32) -> (i32, i32) {
    %c0_i32 = arith.constant 0 : i32
    %c0_i32_0 = arith.constant 0 : i32
    return %arg0, %c0_i32 : i32, i32
  }
}

</mosaic_0001>

<bundles_post_ra>
// kernel: qnet_forward.1
= control target key start
LH: loop header
LB: loop body
LE: loop exit
PB: predicated region body
PF: predicated region fallthrough
CT: control target
= control target key end

     0   :  { %vm227_vm0 = vcmask 1040384   ;;  %vm228_vm1 = vcmask 1041408   ;;  %v1906_v1 = vmov 65535   ;;  %vm130_vm2 = vcmask 23552   ;;  %s2702_s1 = inlined_call_operand.vmem [shape: bf16[3,128], index: 1, kind: input, shape index: {}]   ;;  %s2703_s0 = inlined_call_operand.vmem [shape: f32[504,3], index: 0, kind: input, shape index: {}]   ;;  %s2704_s3 = inlined_call_operand.vmem [shape: bf16[128,128], index: 3, kind: input, shape index: {}]   ;;  %s2705_s2 = inlined_call_operand.vmem [shape: f32[1,128], index: 2, kind: input, shape index: {}]   ;;  %s2706_s5 = inlined_call_operand.vmem [shape: bf16[128,128], index: 5, kind: input, shape index: {}]   ;;  %s2707_s4 = inlined_call_operand.vmem [shape: f32[1,128], index: 4, kind: input, shape index: {}]   ;;  %s2708_s6 = inlined_call_operand.vmem [shape: f32[1,128], index: 6, kind: input, shape index: {}]   ;;  %s2709_s7 = inlined_call_operand.vmem [shape: f32[504,128], index: 7, kind: output, shape index: {}]  }
   0x1   :  { %v122_v0 = vld [vmem:[%s2702_s1] sm:$0x3]  ;;  %v229_v2 = vsel %vm227_vm0, 4294967295, %v1906_v1  ;;  %v28_v4 = vld [vmem:[%s2703_s0 + $0x8] sm:$0xff]  ;;  %v29_v7 = vld [vmem:[%s2703_s0 + $0x10] sm:$0xff] }
   0x2   :  { %v27_v3 = vld [vmem:[%s2703_s0] sm:$0xff]  ;;  %v230_v5 = vsel %vm228_vm1, %v229_v2, 0  ;;  %v30_v8 = vld [vmem:[%s2703_s0 + $0x18] sm:$0xff]  ;;  %v32_v11 = vld [vmem:[%s2703_s0 + $0x28] sm:$0xff] }
   0x3   :  { %v90_v6 = vpack.c.bf16 %v28_v4, %v27_v3  ;;  %v232_v9 = vand.u32 %v230_v5, %v122_v0  ;;  %v31_v10 = vld [vmem:[%s2703_s0 + $0x20] sm:$0xff]  ;;  %v91_v12 = vpack.c.bf16 %v30_v8, %v29_v7  ;;  %v33_v14 = vld [vmem:[%s2703_s0 + $0x30] sm:$0xff]  ;;  %v34_v15 = vld [vmem:[%s2703_s0 + $0x38] sm:$0xff] }
   0x4   :  { %v92_v13 = vpack.c.bf16 %v32_v11, %v31_v10  ;;  %v35_v16 = vld [vmem:[%s2703_s0 + $0x40] sm:$0xff]  ;;  %v36_v17 = vld [vmem:[%s2703_s0 + $0x48] sm:$0xff]  ;;  %v61_v20 = vld [vmem:[%s2703_s0 + $0x110] sm:$0xff]  ;;  %v93_v21 = vpack.c.bf16 %v34_v15, %v33_v14 }
   0x5   :  { %1663 = vmatprep.mubr.msk.bf16.mxu0 %vm130_vm2, %v90_v6  ;;  %1661 = vmatprep.subr.bf16.mxu0 %v232_v9  ;;  %v59_v18 = vld [vmem:[%s2703_s0 + $0x100] sm:$0xff]  ;;  %v60_v19 = vld [vmem:[%s2703_s0 + $0x108] sm:$0xff]  ;;  %v62_v23 = vld [vmem:[%s2703_s0 + $0x118] sm:$0xff]  ;;  %v94_v26 = vpack.c.bf16 %v36_v17, %v35_v16 }
   0x6   :  { %1887 = vmatprep.subr.bf16.mxu1 %v232_v9  ;;  %1662 = vmatpush3.bf16.msra.mxu0 %v232_v9  ;;  %v106_v22 = vpack.c.bf16 %v60_v19, %v59_v18  ;;  %v63_v24 = vld [vmem:[%s2703_s0 + $0x120] sm:$0xff]  ;;  %v64_v25 = vld [vmem:[%s2703_s0 + $0x128] sm:$0xff]  ;;  %v107_v27 = vpack.c.bf16 %v62_v23, %v61_v20  ;;  %v37_v29 = vld [vmem:[%s2703_s0 + $0x50] sm:$0xff] }
   0x7   :  { %1888 = vmatpush3.bf16.msra.mxu1 %v232_v9  ;;  %v108_v28 = vpack.c.bf16 %v64_v25, %v63_v24  ;;  %v65_v30 = vld [vmem:[%s2703_s0 + $0x130] sm:$0xff]  ;;  %v66_v31 = vld [vmem:[%s2703_s0 + $0x138] sm:$0xff]  ;;  %v67_v33 = vld [vmem:[%s2703_s0 + $0x140] sm:$0xff] }
   0x8   :  { %1695 = vmatprep.mubr.msk.bf16.mxu1 %vm130_vm2, %v106_v22  ;;  %v38_v32 = vld [vmem:[%s2703_s0 + $0x58] sm:$0xff]  ;;  %v68_v34 = vld [vmem:[%s2703_s0 + $0x148] sm:$0xff]  ;;  %v39_v35 = vld [vmem:[%s2703_s0 + $0x60] sm:$0xff]  ;;  %v109_v37 = vpack.c.bf16 %v66_v31, %v65_v30 }
   0x9   :  { %1664 = vmatmul.mubr.msk.bf16.vlgmr.msra.gmra.mxu0 %vm130_vm2, %v91_v12  ;;  %v40_v36 = vld [vmem:[%s2703_s0 + $0x68] sm:$0xff]  ;;  %v95_v38 = vpack.c.bf16 %v38_v32, %v37_v29  ;;  %v110_v39 = vpack.c.bf16 %v68_v34, %v67_v33  ;;  %v69_v41 = vld [vmem:[%s2703_s0 + $0x150] sm:$0xff]  ;;  %v70_v42 = vld [vmem:[%s2703_s0 + $0x158] sm:$0xff] }
   0xa   :  { %1667 = vmatprep.mubr.msk.bf16.mxu0 %vm130_vm2, %v92_v13  ;;  %1696 = vmatmul.mubr.msk.bf16.vlgmr.msra.gmra.mxu1 %vm130_vm2, %v107_v27  ;;  %v96_v40 = vpack.c.bf16 %v40_v36, %v39_v35  ;;  %v1890_v43 = vld [vmem:[%s2704_s3 + $0x38] sm:$0xff]   ;;  %v41_v44 = vld [vmem:[%s2703_s0 + $0x70] sm:$0xff]  ;;  %v43_v47 = vld [vmem:[%s2703_s0 + $0x80] sm:$0xff]  ;;  %v111_v51 = vpack.c.bf16 %v70_v42, %v69_v41 }
   0xb   :  { %1699 = vmatprep.mubr.msk.bf16.mxu1 %vm130_vm2, %v108_v28  ;;  %v42_v45 = vld [vmem:[%s2703_s0 + $0x78] sm:$0xff]  ;;  %v1891_v46 = vld [vmem:[%s2704_s3 + $0x30] sm:$0xff]   ;;  %v71_v48 = vld [vmem:[%s2703_s0 + $0x160] sm:$0xff]  ;;  %1727 = vmatprep.subr.bf16.mxu1 %v1890_v43 }
   0xc   :  { %v72_v49 = vld [vmem:[%s2703_s0 + $0x168] sm:$0xff]  ;;  %1728 = vmatpush3.bf16.msra.mxu1 %v1890_v43  ;;  %v97_v53 = vpack.c.bf16 %v42_v45, %v41_v44  ;;  %v1893_v56 = vld [vmem:[%s2704_s3 + $0x20] sm:$0xff]   ;;  %v45_v57 = vld [vmem:[%s2703_s0 + $0x90] sm:$0xff] }
   0xd   :  { %v44_v50 = vld [vmem:[%s2703_s0 + $0x88] sm:$0xff]  ;;  %1729 = vmatprep.subr.bf16.mxu1 %v1891_v46  ;;  %v112_v54 = vpack.c.bf16 %v72_v49, %v71_v48  ;;  %v73_v58 = vld [vmem:[%s2703_s0 + $0x170] sm:$0xff]  ;;  %v74_v59 = vld [vmem:[%s2703_s0 + $0x178] sm:$0xff] }
   0xe   :  { %v1892_v52 = vld [vmem:[%s2704_s3 + $0x28] sm:$0xff]   ;;  %v98_v55 = vpack.c.bf16 %v44_v50, %v43_v47  ;;  %v46_v60 = vld [vmem:[%s2703_s0 + $0x98] sm:$0xff]  ;;  %v75_v61 = vld [vmem:[%s2703_s0 + $0x180] sm:$0xff]  ;;  %v113_v1 = vpack.c.bf16 %v74_v59, %v73_v58 }
   0xf   :  { %v76_v62 = vld [vmem:[%s2703_s0 + $0x188] sm:$0xff]  ;;  %v47_v63 = vld [vmem:[%s2703_s0 + $0xa0] sm:$0xff]  ;;  %v1894_v2 = vld [vmem:[%s2704_s3 + $0x18] sm:$0xff]   ;;  %v99_v3 = vpack.c.bf16 %v46_v60, %v45_v57 }
  0x10   :  { %1730 = vmatpush3.bf16.msra.mxu1 %v1891_v46  ;;  %v48_v0 = vld [vmem:[%s2703_s0 + $0xa8] sm:$0xff]  ;;  %v114_v4 = vpack.c.bf16 %v76_v62, %v75_v61  ;;  %v1895_v6 = vld [vmem:[%s2704_s3 + $0x10] sm:$0xff]   ;;  %v78_v9 = vld [vmem:[%s2703_s0 + $0x198] sm:$0xff] }
  0x11   :  { %1668 = vmatmul.mubr.msk.bf16.gmra.mxu0 %vm130_vm2, %v93_v21  ;;  %1731 = vmatprep.subr.bf16.mxu1 %v1892_v52  ;;  %v100_v5 = vpack.c.bf16 %v48_v0, %v47_v63  ;;  %v49_v7 = vld [vmem:[%s2703_s0 + $0xb0] sm:$0xff]  ;;  %v50_v10 = vld [vmem:[%s2703_s0 + $0xb8] sm:$0xff]  ;;  %v79_v11 = vld [vmem:[%s2703_s0 + $0x1a0] sm:$0xff] }
  0x12   :  { %1671 = vmatprep.mubr.msk.bf16.mxu0 %vm130_vm2, %v94_v26  ;;  %1700 = vmatmul.mubr.msk.bf16.gmra.mxu1 %vm130_vm2, %v109_v37  ;;  %v77_v8 = vld [vmem:[%s2703_s0 + $0x190] sm:$0xff]  ;;  %v80_v12 = vld [vmem:[%s2703_s0 + $0x1a8] sm:$0xff]  ;;  %v51_v13 = vld [vmem:[%s2703_s0 + $0xc0] sm:$0xff]  ;;  %v101_v17 = vpack.c.bf16 %v50_v10, %v49_v7 }
  0x13   :  { %1703 = vmatprep.mubr.msk.bf16.mxu1 %vm130_vm2, %v110_v39  ;;  %v52_v14 = vld [vmem:[%s2703_s0 + $0xc8] sm:$0xff]  ;;  %v115_v15 = vpack.c.bf16 %v78_v9, %v77_v8  ;;  %v116_v18 = vpack.c.bf16 %v80_v12, %v79_v11  ;;  %v53_v20 = vld [vmem:[%s2703_s0 + $0xd0] sm:$0xff]  ;;  %v82_v22 = vld [vmem:[%s2703_s0 + $0x1b8] sm:$0xff] }
  0x14   :  { %1732 = vmatpush3.bf16.msra.mxu1 %v1892_v52  ;;  %v1896_v16 = vld [vmem:[%s2704_s3 + $0x8] sm:$0xff]   ;;  %v102_v19 = vpack.c.bf16 %v52_v14, %v51_v13  ;;  %v81_v21 = vld [vmem:[%s2703_s0 + $0x1b0] sm:$0xff]  ;;  %v54_v23 = vld [vmem:[%s2703_s0 + $0xd8] sm:$0xff] }
  0x15   :  { %1733 = vmatprep.subr.bf16.mxu1 %v1893_v56  ;;  %v83_v24 = vld [vmem:[%s2703_s0 + $0x1c0] sm:$0xff]  ;;  %v84_v25 = vld [vmem:[%s2703_s0 + $0x1c8] sm:$0xff]  ;;  %v117_v28 = vpack.c.bf16 %v82_v22, %v81_v21  ;;  %v103_v29 = vpack.c.bf16 %v54_v23, %v53_v20  ;;  %v57_v32 = vld [vmem:[%s2703_s0 + $0xf0] sm:$0xff] }
  0x16   :  { %v55_v26 = vld [vmem:[%s2703_s0 + $0xe0] sm:$0xff]  ;;  %v56_v27 = vld [vmem:[%s2703_s0 + $0xe8] sm:$0xff]  ;;  %v118_v30 = vpack.c.bf16 %v84_v25, %v83_v24  ;;  %v85_v33 = vld [vmem:[%s2703_s0 + $0x1d0] sm:$0xff] }
  0x17   :  { %v104_v31 = vpack.c.bf16 %v56_v27, %v55_v26  ;;  %v86_v34 = vld [vmem:[%s2703_s0 + $0x1d8] sm:$0xff]  ;;  %v87_v36 = vld [vmem:[%s2703_s0 + $0x1e0] sm:$0xff]  ;;  %v88_v37 = vld [vmem:[%s2703_s0 + $0x1e8] sm:$0xff] }
  0x18   :  { %1734 = vmatpush3.bf16.msra.mxu1 %v1893_v56  ;;  %v58_v35 = vld [vmem:[%s2703_s0 + $0xf8] sm:$0xff]  ;;  %v89_v41 = vld [vmem:[%s2703_s0 + $0x1f0] sm:$0xff]  ;;  %v1897_v43 = vld [vmem:[%s2704_s3] sm:$0xff]  }
  0x19   :  { %1672 = vmatmul.mubr.msk.bf16.gmra.mxu0 %vm130_vm2, %v95_v38  ;;  %1735 = vmatprep.subr.bf16.mxu1 %v1894_v2  ;;  %v119_v38 = vpack.c.bf16 %v86_v34, %v85_v33  ;;  %v105_v39 = vpack.c.bf16 %v58_v35, %v57_v32  ;;  %v121_v42 = vpack.c.bf16 %v89_v41, %v89_v41  ;;  %v2198_v46 = vld [vmem:[%s2705_s2] ss:$0 sm:$0xff]  ;;  %v1899_v57 = vld [vmem:[%s2706_s5 + $0x30] sm:$0xff]   ;;  %v1902_v21 = vld [vmem:[%s2706_s5 + $0x18] sm:$0xff]  }
  0x1a   :  { %1675 = vmatprep.mubr.msk.bf16.mxu0 %vm130_vm2, %v96_v40  ;;  %1704 = vmatmul.mubr.msk.bf16.gmra.mxu1 %vm130_vm2, %v111_v51  ;;  %v120_v40 = vpack.c.bf16 %v88_v37, %v87_v36  ;;  %v1901_v11 = vld [vmem:[%s2706_s5 + $0x20] sm:$0xff]   ;;  %v1904_v41 = vld [vmem:[%s2706_s5 + $0x8] sm:$0xff]  }
  0x1b   :  { %1707 = vmatprep.mubr.msk.bf16.mxu1 %vm130_vm2, %v112_v54  ;;  %v1898_v54 = vld [vmem:[%s2706_s5 + $0x38] sm:$0xff]  }
  0x1c   :  { %1736 = vmatpush3.bf16.msra.mxu1 %v1894_v2  ;;  %1807 = vmatprep.subr.bf16.mxu0 %v1898_v54 }
  0x1d   :  { %1737 = vmatprep.subr.bf16.mxu1 %v1895_v6  ;;  %1808 = vmatpush3.bf16.msra.mxu0 %v1898_v54 }
  0x1e   :  { %1809 = vmatprep.subr.bf16.mxu0 %v1899_v57 }
  0x20   :  { %1738 = vmatpush3.bf16.msra.mxu1 %v1895_v6 }
  0x21   :  { %1676 = vmatmul.mubr.msk.bf16.gmra.mxu0 %vm130_vm2, %v97_v53  ;;  %1739 = vmatprep.subr.bf16.mxu1 %v1896_v16 }
  0x22   :  { %1679 = vmatprep.mubr.msk.bf16.mxu0 %vm130_vm2, %v98_v55  ;;  %1708 = vmatmul.mubr.msk.bf16.gmra.mxu1 %vm130_vm2, %v113_v1  ;;  %v1900_v1 = vld [vmem:[%s2706_s5 + $0x28] sm:$0xff]  }
  0x23   :  { %1711 = vmatprep.mubr.msk.bf16.mxu1 %vm130_vm2, %v114_v4  ;;  %1810 = vmatpush3.bf16.msra.mxu0 %v1899_v57 }
  0x24   :  { %1740 = vmatpush3.bf16.msra.mxu1 %v1896_v16  ;;  %1811 = vmatprep.subr.bf16.mxu0 %v1900_v1 }
  0x25   :  { %1741 = vmatprep.subr.bf16.mxu1 %v1897_v43 }
  0x27   :  { %1812 = vmatpush3.bf16.msra.mxu0 %v1900_v1 }
  0x28   :  { %1742 = vmatpush3.bf16.msra.mxu1 %v1897_v43  ;;  %1813 = vmatprep.subr.bf16.mxu0 %v1901_v11 }
  0x29   :  { %1680 = vmatmul.mubr.msk.bf16.gmra.mxu0 %vm130_vm2, %v99_v3 }
  0x2a   :  { %1683 = vmatprep.mubr.msk.bf16.mxu0 %vm130_vm2, %v100_v5  ;;  %1712 = vmatmul.mubr.msk.bf16.gmra.mxu1 %vm130_vm2, %v115_v15 }
  0x2b   :  { %1715 = vmatprep.mubr.msk.bf16.mxu1 %vm130_vm2, %v116_v18  ;;  %1814 = vmatpush3.bf16.msra.mxu0 %v1901_v11 }
  0x2c   :  { %1815 = vmatprep.subr.bf16.mxu0 %v1902_v21 }
  0x2f   :  { %1816 = vmatpush3.bf16.msra.mxu0 %v1902_v21 }
  0x31   :  { %1684 = vmatmul.mubr.msk.bf16.gmra.mxu0 %vm130_vm2, %v101_v17 }
  0x32   :  { %1687 = vmatprep.mubr.msk.bf16.mxu0 %vm130_vm2, %v102_v19  ;;  %1716 = vmatmul.mubr.msk.bf16.gmra.mxu1 %vm130_vm2, %v117_v28 }
  0x33   :  { %1719 = vmatprep.mubr.msk.bf16.mxu1 %vm130_vm2, %v118_v30 }
  0x39   :  { %1688 = vmatmul.mubr.msk.bf16.gmra.mxu0 %vm130_vm2, %v103_v29 }
  0x3a   :  { %1691 = vmatprep.mubr.msk.bf16.mxu0 %vm130_vm2, %v104_v31  ;;  %1720 = vmatmul.mubr.msk.bf16.gmra.mxu1 %vm130_vm2, %v119_v38  ;;  %v1903_v31 = vld [vmem:[%s2706_s5 + $0x10] sm:$0xff]  }
  0x3b   :  { %1723 = vmatprep.mubr.msk.bf16.mxu1 %vm130_vm2, %v120_v40  ;;  %1817 = vmatprep.subr.bf16.mxu0 %v1903_v31 }
  0x3c   :  { %1818 = vmatpush3.bf16.msra.mxu0 %v1903_v31 }
  0x3d   :  { %1819 = vmatprep.subr.bf16.mxu0 %v1904_v41 }
  0x40   :  { %1820 = vmatpush3.bf16.msra.mxu0 %v1904_v41 }
  0x41   :  { %1692 = vmatmul.mubr.msk.bf16.gmra.mxu0 %vm130_vm2, %v105_v39 }
  0x42   :  { %1724 = vmatmul.mubr.msk.bf16.gmra.mxu1 %vm130_vm2, %v121_v42 }
  0xc9   :  { %v1665_v44 = vpop.f32.mrf.mxu0 }
  0xca   :  { %v277_v50 = vadd.f32 %v1665_v44, %v2198_v46  ;;  %v2204_v53 = vpop.f32.mrf.mxu1 }
  0xcb   :  { %v268_v45 = vpop.f32.mrf.mxu0 }
  0xcc   :  { %v269_v48 = vadd.f32 %v2198_v46, %v268_v45  ;;  %v2212_v60 = vpop.f32.mrf.mxu1  ;;  %v524_v61 = vmax.f32 %v277_v50, 0.0 }
  0xcd   :  { %v1666_v47 = vpop.f32.mrf.mxu0 }
  0xce   :  { %v280_v49 = vadd.f32 %v1666_v47, %v2198_v46  ;;  %v522_v58 = vmax.f32 %v269_v48, 0.0  ;;  %v2214_v0 = vpop.f32.mrf.mxu1 }
  0xcf   :  { %v271_v51 = vpop.f32.mrf.mxu0 }
  0xd0   :  { %v272_v52 = vadd.f32 %v2198_v46, %v271_v51  ;;  %v525_v55 = vmax.f32 %v280_v49, 0.0  ;;  %v2221_v6 = vpop.f32.mrf.mxu1 }
  0xd1   :  { %v1669_v56 = vpop.f32.mrf.mxu0 }
  0xd2   :  { %v523_v59 = vmax.f32 %v272_v52, 0.0  ;;  %v586_v2 = vpack.c.bf16 %v525_v55, %v524_v61  ;;  %v293_v7 = vadd.f32 %v1669_v56, %v2198_v46  ;;  %v2225_v10 = vpop.f32.mrf.mxu1 }
  0xd3   :  { %v284_v62 = vpop.f32.mrf.mxu0 }
  0xd4   :  { %v585_v63 = vpack.c.bf16 %v523_v59, %v522_v58  ;;  %v285_v4 = vadd.f32 %v2198_v46, %v284_v62  ;;  %v2230_v16 = vpop.f32.mrf.mxu1  ;;  %v528_v17 = vmax.f32 %v293_v7, 0.0 }
  0xd5   :  { %v1670_v3 = vpop.f32.mrf.mxu0 }
  0xd6   :  { %v296_v5 = vadd.f32 %v1670_v3, %v2198_v46  ;;  %1743 = vmatprep.mubr.bf16.mxu1 %v585_v63  ;;  %v526_v14 = vmax.f32 %v285_v4, 0.0  ;;  %v2232_v20 = vpop.f32.mrf.mxu1 }
  0xd7   :  { %v287_v8 = vpop.f32.mrf.mxu0  ;;  %1744 = vmatmul.mubr.bf16.vlgmr.msra.gmra.mxu1 %v586_v2 }
  0xd8   :  { %v288_v9 = vadd.f32 %v2198_v46, %v287_v8  ;;  %v529_v12 = vmax.f32 %v296_v5, 0.0  ;;  %v2239_v26 = vpop.f32.mrf.mxu1 }
  0xd9   :  { %v1673_v13 = vpop.f32.mrf.mxu0 }
  0xda   :  { %v527_v15 = vmax.f32 %v288_v9, 0.0  ;;  %v588_v22 = vpack.c.bf16 %v529_v12, %v528_v17  ;;  %v309_v27 = vadd.f32 %v1673_v13, %v2198_v46  ;;  %v2243_v30 = vpop.f32.mrf.mxu1 }
  0xdb   :  { %v300_v18 = vpop.f32.mrf.mxu0 }
  0xdc   :  { %v587_v19 = vpack.c.bf16 %v527_v15, %v526_v14  ;;  %v301_v24 = vadd.f32 %v2198_v46, %v300_v18  ;;  %v2248_v36 = vpop.f32.mrf.mxu1  ;;  %v532_v37 = vmax.f32 %v309_v27, 0.0 }
  0xdd   :  { %v1674_v23 = vpop.f32.mrf.mxu0 }
  0xde   :  { %v312_v25 = vadd.f32 %v1674_v23, %v2198_v46  ;;  %1747 = vmatprep.mubr.bf16.mxu1 %v587_v19  ;;  %v530_v34 = vmax.f32 %v301_v24, 0.0  ;;  %v2250_v40 = vpop.f32.mrf.mxu1 }
  0xdf   :  { %v303_v28 = vpop.f32.mrf.mxu0  ;;  %1748 = vmatmul.mubr.bf16.gmra.mxu1 %v588_v22 }
  0xe0   :  { %v304_v29 = vadd.f32 %v2198_v46, %v303_v28  ;;  %v533_v32 = vmax.f32 %v312_v25, 0.0  ;;  %v2257_v47 = vpop.f32.mrf.mxu1 }
  0xe1   :  { %v1677_v33 = vpop.f32.mrf.mxu0 }
  0xe2   :  { %v531_v35 = vmax.f32 %v304_v29, 0.0  ;;  %v590_v42 = vpack.c.bf16 %v533_v32, %v532_v37  ;;  %v325_v48 = vadd.f32 %v1677_v33, %v2198_v46  ;;  %v2261_v51 = vpop.f32.mrf.mxu1 }
  0xe3   :  { %v316_v38 = vpop.f32.mrf.mxu0 }
  0xe4   :  { %v589_v39 = vpack.c.bf16 %v531_v35, %v530_v34  ;;  %v317_v44 = vadd.f32 %v2198_v46, %v316_v38  ;;  %v2263_v57 = vpop.f32.mrf.mxu1  ;;  %v536_v58 = vmax.f32 %v325_v48, 0.0 }
  0xe5   :  { %v1678_v43 = vpop.f32.mrf.mxu0 }
  0xe6   :  { %v328_v45 = vadd.f32 %v1678_v43, %v2198_v46  ;;  %1751 = vmatprep.mubr.bf16.mxu1 %v589_v39  ;;  %v534_v55 = vmax.f32 %v317_v44, 0.0  ;;  %v2265_v62 = vpop.f32.mrf.mxu1 }
  0xe7   :  { %v319_v49 = vpop.f32.mrf.mxu0  ;;  %1752 = vmatmul.mubr.bf16.gmra.mxu1 %v590_v42 }
  0xe8   :  { %v320_v50 = vadd.f32 %v2198_v46, %v319_v49  ;;  %v537_v52 = vmax.f32 %v328_v45, 0.0  ;;  %v2269_v4 = vpop.f32.mrf.mxu1 }
  0xe9   :  { %v1681_v54 = vpop.f32.mrf.mxu0 }
  0xea   :  { %v535_v56 = vmax.f32 %v320_v50, 0.0  ;;  %v592_v63 = vpack.c.bf16 %v537_v52, %v536_v58  ;;  %v341_v5 = vadd.f32 %v1681_v54, %v2198_v46  ;;  %v2273_v9 = vpop.f32.mrf.mxu1 }
  0xeb   :  { %v332_v59 = vpop.f32.mrf.mxu0 }
  0xec   :  { %v591_v61 = vpack.c.bf16 %v535_v56, %v534_v55  ;;  %v333_v2 = vadd.f32 %v2198_v46, %v332_v59  ;;  %v2275_v15 = vpop.f32.mrf.mxu1  ;;  %v540_v17 = vmax.f32 %v341_v5, 0.0 }
  0xed   :  { %v1682_v1 = vpop.f32.mrf.mxu0 }
  0xee   :  { %v344_v3 = vadd.f32 %v1682_v1, %v2198_v46  ;;  %1755 = vmatprep.mubr.bf16.mxu1 %v591_v61  ;;  %v538_v13 = vmax.f32 %v333_v2, 0.0  ;;  %v2277_v21 = vpop.f32.mrf.mxu1 }
  0xef   :  { %v335_v7 = vpop.f32.mrf.mxu0  ;;  %1756 = vmatmul.mubr.bf16.gmra.mxu1 %v592_v63 }
  0xf0   :  { %v336_v8 = vadd.f32 %v2198_v46, %v335_v7  ;;  %v541_v11 = vmax.f32 %v344_v3, 0.0  ;;  %v2281_v27 = vpop.f32.mrf.mxu1  ;;  %v397_v7 = vadd.f32 %v2198_v46, %v2212_v60 }
  0xf1   :  { %v1685_v12 = vpop.f32.mrf.mxu0 }
  0xf2   :  { %v539_v14 = vmax.f32 %v336_v8, 0.0  ;;  %v594_v22 = vpack.c.bf16 %v541_v11, %v540_v17  ;;  %v357_v28 = vadd.f32 %v1685_v12, %v2198_v46  ;;  %v2285_v32 = vpop.f32.mrf.mxu1  ;;  %v400_v8 = vadd.f32 %v2198_v46, %v2221_v6 }
  0xf3   :  { %v348_v18 = vpop.f32.mrf.mxu0 }
  0xf4   :  { %v593_v19 = vpack.c.bf16 %v539_v14, %v538_v13  ;;  %v349_v24 = vadd.f32 %v2198_v46, %v348_v18  ;;  %v2287_v38 = vpop.f32.mrf.mxu1  ;;  %v544_v39 = vmax.f32 %v357_v28, 0.0 }
  0xf5   :  { %v1686_v23 = vpop.f32.mrf.mxu0 }
  0xf6   :  { %v360_v25 = vadd.f32 %v1686_v23, %v2198_v46  ;;  %1759 = vmatprep.mubr.bf16.mxu1 %v593_v19  ;;  %v542_v35 = vmax.f32 %v349_v24, 0.0  ;;  %v2289_v43 = vpop.f32.mrf.mxu1  ;;  %v554_v23 = vmax.f32 %v397_v7, 0.0  ;;  %v555_v24 = vmax.f32 %v400_v8, 0.0  ;;  %v1905_v7 = vld [vmem:[%s2706_s5] sm:$0xff]  }
  0xf7   :  { %v351_v29 = vpop.f32.mrf.mxu0  ;;  %1760 = vmatmul.mubr.bf16.gmra.mxu1 %v594_v22  ;;  %1821 = vmatprep.subr.bf16.mxu0 %v1905_v7 }
  0xf8   :  { %v352_v31 = vadd.f32 %v2198_v46, %v351_v29  ;;  %v545_v33 = vmax.f32 %v360_v25, 0.0  ;;  %v2293_v50 = vpop.f32.mrf.mxu1  ;;  %1822 = vmatpush3.bf16.msra.mxu0 %v1905_v7 }
  0xf9   :  { %v1689_v34 = vpop.f32.mrf.mxu0 }
  0xfa   :  { %v543_v37 = vmax.f32 %v352_v31, 0.0  ;;  %v596_v44 = vpack.c.bf16 %v545_v33, %v544_v39  ;;  %v373_v52 = vadd.f32 %v1689_v34, %v2198_v46  ;;  %v2297_v56 = vpop.f32.mrf.mxu1  ;;  %v416_v39 = vadd.f32 %v2198_v46, %v2239_v26 }
  0xfb   :  { %v364_v41 = vpop.f32.mrf.mxu0  ;;  %v432_v26 = vadd.f32 %v2198_v46, %v2257_v47  ;;  %v448_v47 = vadd.f32 %v2198_v46, %v2269_v4 }
  0xfc   :  { %v595_v42 = vpack.c.bf16 %v543_v37, %v542_v35  ;;  %v365_v48 = vadd.f32 %v2198_v46, %v364_v41  ;;  %v2299_v1 = vpop.f32.mrf.mxu1  ;;  %v548_v2 = vmax.f32 %v373_v52, 0.0  ;;  %v601_v35 = vpack.c.bf16 %v555_v24, %v554_v23 }
  0xfd   :  { %v1690_v45 = vpop.f32.mrf.mxu0  ;;  %v413_v37 = vadd.f32 %v2198_v46, %v2230_v16  ;;  %v429_v16 = vadd.f32 %v2198_v46, %v2248_v36  ;;  %v445_v36 = vadd.f32 %v2198_v46, %v2263_v57 }
  0xfe   :  { %v376_v49 = vadd.f32 %v1690_v45, %v2198_v46  ;;  %1763 = vmatprep.mubr.bf16.mxu1 %v595_v42  ;;  %v546_v61 = vmax.f32 %v365_v48, 0.0  ;;  %v2305_v11 = vpop.f32.mrf.mxu1  ;;  %v405_v42 = vadd.f32 %v2204_v53, %v2198_v46  ;;  %v408_v45 = vadd.f32 %v2214_v0, %v2198_v46 }
  0xff   :  { %v367_v54 = vpop.f32.mrf.mxu0  ;;  %1764 = vmatmul.mubr.bf16.gmra.mxu1 %v596_v44  ;;  %v558_v48 = vmax.f32 %v413_v37, 0.0  ;;  %v421_v53 = vadd.f32 %v2225_v10, %v2198_v46  ;;  %v424_v0 = vadd.f32 %v2232_v20, %v2198_v46  ;;  %v437_v10 = vadd.f32 %v2243_v30, %v2198_v46 }
 0x100   :  { %v368_v55 = vadd.f32 %v2198_v46, %v367_v54  ;;  %v549_v58 = vmax.f32 %v376_v49, 0.0  ;;  %v2309_v18 = vpop.f32.mrf.mxu1  ;;  %v559_v49 = vmax.f32 %v416_v39, 0.0  ;;  %v556_v52 = vmax.f32 %v405_v42, 0.0 }
 0x101   :  { %v1693_v59 = vpop.f32.mrf.mxu0  ;;  %v557_v54 = vmax.f32 %v408_v45, 0.0  ;;  %v440_v20 = vadd.f32 %v2250_v40, %v2198_v46  ;;  %v566_v8 = vmax.f32 %v445_v36, 0.0  ;;  %v464_v30 = vadd.f32 %v2198_v46, %v2281_v27 }
 0x102   :  { %v547_v63 = vmax.f32 %v368_v55, 0.0  ;;  %v598_v12 = vpack.c.bf16 %v549_v58, %v548_v2  ;;  %v389_v19 = vadd.f32 %v1693_v59, %v2198_v46  ;;  %v2313_v6 = vpop.f32.mrf.mxu1  ;;  %v603_v55 = vpack.c.bf16 %v559_v49, %v558_v48 }
 0x103   :  { %v380_v3 = vpop.f32.mrf.mxu0  ;;  %v602_v58 = vpack.c.bf16 %v557_v54, %v556_v52  ;;  %v562_v59 = vmax.f32 %v429_v16, 0.0  ;;  %v561_v2 = vmax.f32 %v424_v0, 0.0  ;;  %v565_v57 = vmax.f32 %v440_v20, 0.0 }
 0x104   :  { %v597_v5 = vpack.c.bf16 %v547_v63, %v546_v61  ;;  %v381_v14 = vadd.f32 %v2198_v46, %v380_v3  ;;  %v2315_v31 = vpop.f32.mrf.mxu1  ;;  %v552_v33 = vmax.f32 %v389_v19, 0.0  ;;  %v563_v61 = vmax.f32 %v432_v26, 0.0 }
 0x105   :  { %v1694_v13 = vpop.f32.mrf.mxu0  ;;  %v560_v63 = vmax.f32 %v421_v53, 0.0  ;;  %v456_v19 = vadd.f32 %v2265_v62, %v2198_v46  ;;  %v571_v23 = vmax.f32 %v464_v30, 0.0  ;;  %v480_v27 = vadd.f32 %v2198_v46, %v2293_v50 }
 0x106   :  { %v392_v17 = vadd.f32 %v1694_v13, %v2198_v46  ;;  %1767 = vmatprep.mubr.bf16.mxu1 %v597_v5  ;;  %v550_v28 = vmax.f32 %v381_v14, 0.0  ;;  %v1726_v41 = vpop.f32.mrf.mxu1  ;;  %v605_v3 = vpack.c.bf16 %v563_v61, %v562_v59  ;;  %v564_v13 = vmax.f32 %v437_v10, 0.0 }
 0x107   :  { %v383_v22 = vpop.f32.mrf.mxu0  ;;  %1768 = vmatmul.mubr.bf16.gmra.mxu1 %v598_v12  ;;  %v604_v5 = vpack.c.bf16 %v561_v2, %v560_v63  ;;  %v567_v12 = vmax.f32 %v448_v47, 0.0  ;;  %v461_v14 = vadd.f32 %v2198_v46, %v2275_v15  ;;  %v569_v24 = vmax.f32 %v456_v19, 0.0 }
 0x108   :  { %v384_v60 = vadd.f32 %v2198_v46, %v383_v22  ;;  %v553_v25 = vmax.f32 %v392_v17, 0.0  ;;  %v606_v40 = vpack.c.bf16 %v565_v57, %v564_v13  ;;  %v453_v17 = vadd.f32 %v2261_v51, %v2198_v46  ;;  %v511_v48 = vpop.f32.mrf.mxu1 }
 0x109   :  { %v607_v4 = vpack.c.bf16 %v567_v12, %v566_v8  ;;  %v570_v22 = vmax.f32 %v461_v14, 0.0  ;;  %v477_v15 = vadd.f32 %v2198_v46, %v2287_v38  ;;  %v469_v51 = vadd.f32 %v2273_v9, %v2198_v46 }
 0x10a   :  { %v551_v29 = vmax.f32 %v384_v60, 0.0  ;;  %v600_v44 = vpack.c.bf16 %v553_v25, %v552_v33  ;;  %v568_v60 = vmax.f32 %v453_v17, 0.0  ;;  %v472_v62 = vadd.f32 %v2277_v21, %v2198_v46 }
 0x10b   :  { %v609_v25 = vpack.c.bf16 %v571_v23, %v570_v22  ;;  %v575_v33 = vmax.f32 %v480_v27, 0.0  ;;  %v493_v38 = vadd.f32 %v2198_v46, %v2299_v1  ;;  %v496_v50 = vadd.f32 %v2198_v46, %v2309_v18 }
 0x10c   :  { %v599_v34 = vpack.c.bf16 %v551_v29, %v550_v28  ;;  %v608_v28 = vpack.c.bf16 %v569_v24, %v568_v60  ;;  %v574_v29 = vmax.f32 %v477_v15, 0.0  ;;  %v485_v9 = vadd.f32 %v2285_v32, %v2198_v46 }
 0x10d   :  { %v488_v21 = vadd.f32 %v2289_v43, %v2198_v46  ;;  %v578_v41 = vmax.f32 %v493_v38, 0.0  ;;  %v579_v42 = vmax.f32 %v496_v50, 0.0  ;;  %v509_v1 = vadd.f32 %v2198_v46, %v2315_v31 }
 0x10e   :  { %1771 = vmatprep.mubr.bf16.mxu1 %v599_v34  ;;  %v572_v34 = vmax.f32 %v469_v51, 0.0  ;;  %v611_v37 = vpack.c.bf16 %v575_v33, %v574_v29  ;;  %v512_v18 = vadd.f32 %v2198_v46, %v511_v48  ;;  %v501_v32 = vadd.f32 %v2297_v56, %v2198_v46 }
 0x10f   :  { %1772 = vmatmul.mubr.bf16.gmra.mxu1 %v600_v44  ;;  %v576_v44 = vmax.f32 %v485_v9, 0.0  ;;  %v577_v45 = vmax.f32 %v488_v21, 0.0  ;;  %v613_v49 = vpack.c.bf16 %v579_v42, %v578_v41  ;;  %v504_v43 = vadd.f32 %v2305_v11, %v2198_v46  ;;  %v2380_v11 = vld [vmem:[%s2707_s4] ss:$0 sm:$0xff] }
 0x110   :  { %1775 = vmatprep.mubr.bf16.mxu1 %v601_v35  ;;  %v573_v35 = vmax.f32 %v472_v62, 0.0  ;;  %v582_v54 = vmax.f32 %v509_v1, 0.0  ;;  %v580_v16 = vmax.f32 %v501_v32, 0.0  ;;  %v517_v31 = vadd.f32 %v2313_v6, %v2198_v46 }
 0x111   :  { %v612_v52 = vpack.c.bf16 %v577_v45, %v576_v44  ;;  %v581_v26 = vmax.f32 %v504_v43, 0.0 }
 0x112   :  { %v610_v39 = vpack.c.bf16 %v573_v35, %v572_v34  ;;  %v584_v0 = vmax.f32 %v517_v31, 0.0 }
 0x113   :  { %v614_v53 = vpack.c.bf16 %v581_v26, %v580_v16 }
 0x114   :  { %v616_v59 = vpack.c.bf16 %v584_v0, %v584_v0 }
 0x117   :  { %1776 = vmatmul.mubr.bf16.gmra.mxu1 %v602_v58 }
 0x118   :  { %1779 = vmatprep.mubr.bf16.mxu1 %v603_v55  ;;  %v583_v55 = vmax.f32 %v512_v18, 0.0 }
 0x11a   :  { %v615_v58 = vpack.c.bf16 %v583_v55, %v582_v54 }
 0x11f   :  { %1780 = vmatmul.mubr.bf16.gmra.mxu1 %v604_v5 }
 0x120   :  { %1783 = vmatprep.mubr.bf16.mxu1 %v605_v3 }
 0x127   :  { %1784 = vmatmul.mubr.bf16.gmra.mxu1 %v606_v40 }
 0x128   :  { %1787 = vmatprep.mubr.bf16.mxu1 %v607_v4 }
 0x12f   :  { %1788 = vmatmul.mubr.bf16.gmra.mxu1 %v608_v28 }
 0x130   :  { %1791 = vmatprep.mubr.bf16.mxu1 %v609_v25 }
 0x137   :  { %1792 = vmatmul.mubr.bf16.gmra.mxu1 %v610_v39 }
 0x138   :  { %1795 = vmatprep.mubr.bf16.mxu1 %v611_v37 }
 0x13f   :  { %1796 = vmatmul.mubr.bf16.gmra.mxu1 %v612_v52 }
 0x140   :  { %1799 = vmatprep.mubr.bf16.mxu1 %v613_v49 }
 0x147   :  { %1800 = vmatmul.mubr.bf16.gmra.mxu1 %v614_v53 }
 0x148   :  { %1803 = vmatprep.mubr.bf16.mxu1 %v615_v58 }
 0x14f   :  { %1804 = vmatmul.mubr.bf16.gmra.mxu1 %v616_v59 }
 0x197   :  { %v1745_v56 = vpop.f32.mrf.mxu1 }
 0x198   :  { %v731_v36 = vadd.f32 %v1745_v56, %v2380_v11 }
 0x199   :  { %v722_v61 = vpop.f32.mrf.mxu1 }
 0x19a   :  { %v723_v2 = vadd.f32 %v2380_v11, %v722_v61  ;;  %v978_v7 = vmax.f32 %v731_v36, 0.0 }
 0x19b   :  { %v1746_v63 = vpop.f32.mrf.mxu1 }
 0x19c   :  { %v734_v3 = vadd.f32 %v1746_v63, %v2380_v11  ;;  %v976_v10 = vmax.f32 %v723_v2, 0.0 }
 0x19d   :  { %v725_v46 = vpop.f32.mrf.mxu1 }
 0x19e   :  { %v726_v6 = vadd.f32 %v2380_v11, %v725_v46  ;;  %v979_v47 = vmax.f32 %v734_v3, 0.0 }
 0x19f   :  { %v1749_v5 = vpop.f32.mrf.mxu1 }
 0x1a0   :  { %v977_v20 = vmax.f32 %v726_v6, 0.0  ;;  %v1040_v13 = vpack.c.bf16 %v979_v47, %v978_v7  ;;  %v747_v30 = vadd.f32 %v1749_v5, %v2380_v11 }
 0x1a1   :  { %v738_v8 = vpop.f32.mrf.mxu1 }
 0x1a2   :  { %v1039_v12 = vpack.c.bf16 %v977_v20, %v976_v10  ;;  %v739_v4 = vadd.f32 %v2380_v11, %v738_v8  ;;  %v982_v24 = vmax.f32 %v747_v30, 0.0 }
 0x1a3   :  { %v1750_v57 = vpop.f32.mrf.mxu1 }
 0x1a4   :  { %v750_v14 = vadd.f32 %v1750_v57, %v2380_v11  ;;  %1823 = vmatprep.mubr.bf16.mxu0 %v1039_v12  ;;  %v980_v23 = vmax.f32 %v739_v4, 0.0 }
 0x1a5   :  { %v741_v40 = vpop.f32.mrf.mxu1  ;;  %1824 = vmatmul.mubr.bf16.vlgmr.msra.gmra.mxu0 %v1040_v13 }
 0x1a6   :  { %v742_v17 = vadd.f32 %v2380_v11, %v741_v40  ;;  %v983_v19 = vmax.f32 %v750_v14, 0.0 }
 0x1a7   :  { %v1753_v22 = vpop.f32.mrf.mxu1 }
 0x1a8   :  { %v981_v60 = vmax.f32 %v742_v17, 0.0  ;;  %v1042_v27 = vpack.c.bf16 %v983_v19, %v982_v24  ;;  %v763_v29 = vadd.f32 %v1753_v22, %v2380_v11 }
 0x1a9   :  { %v754_v25 = vpop.f32.mrf.mxu1 }
 0x1aa   :  { %v1041_v15 = vpack.c.bf16 %v981_v60, %v980_v23  ;;  %v755_v51 = vadd.f32 %v2380_v11, %v754_v25  ;;  %v986_v39 = vmax.f32 %v763_v29, 0.0 }
 0x1ab   :  { %v1754_v28 = vpop.f32.mrf.mxu1 }
 0x1ac   :  { %v766_v62 = vadd.f32 %v1754_v28, %v2380_v11  ;;  %1827 = vmatprep.mubr.bf16.mxu0 %v1041_v15  ;;  %v984_v38 = vmax.f32 %v755_v51, 0.0 }
 0x1ad   :  { %v757_v33 = vpop.f32.mrf.mxu1  ;;  %1828 = vmatmul.mubr.bf16.gmra.mxu0 %v1042_v27 }
 0x1ae   :  { %v758_v34 = vadd.f32 %v2380_v11, %v757_v33  ;;  %v987_v35 = vmax.f32 %v766_v62, 0.0 }
 0x1af   :  { %v1757_v37 = vpop.f32.mrf.mxu1 }
 0x1b0   :  { %v985_v50 = vmax.f32 %v758_v34, 0.0  ;;  %v1044_v41 = vpack.c.bf16 %v987_v35, %v986_v39  ;;  %v779_v48 = vadd.f32 %v1757_v37, %v2380_v11 }
 0x1b1   :  { %v770_v9 = vpop.f32.mrf.mxu1 }
 0x1b2   :  { %v1043_v21 = vpack.c.bf16 %v985_v50, %v984_v38  ;;  %v771_v44 = vadd.f32 %v2380_v11, %v770_v9  ;;  %v990_v54 = vmax.f32 %v779_v48, 0.0 }
 0x1b3   :  { %v1758_v42 = vpop.f32.mrf.mxu1 }
 0x1b4   :  { %v782_v45 = vadd.f32 %v1758_v42, %v2380_v11  ;;  %1831 = vmatprep.mubr.bf16.mxu0 %v1043_v21  ;;  %v988_v32 = vmax.f32 %v771_v44, 0.0 }
 0x1b5   :  { %v773_v49 = vpop.f32.mrf.mxu1  ;;  %1832 = vmatmul.mubr.bf16.gmra.mxu0 %v1044_v41 }
 0x1b6   :  { %v774_v1 = vadd.f32 %v2380_v11, %v773_v49  ;;  %v991_v18 = vmax.f32 %v782_v45, 0.0 }
 0x1b7   :  { %v1761_v52 = vpop.f32.mrf.mxu1 }
 0x1b8   :  { %v989_v43 = vmax.f32 %v774_v1, 0.0  ;;  %v1046_v26 = vpack.c.bf16 %v991_v18, %v990_v54  ;;  %v795_v0 = vadd.f32 %v1761_v52, %v2380_v11 }
 0x1b9   :  { %v786_v55 = vpop.f32.mrf.mxu1 }
 0x1ba   :  { %v1045_v16 = vpack.c.bf16 %v989_v43, %v988_v32  ;;  %v787_v53 = vadd.f32 %v2380_v11, %v786_v55  ;;  %v994_v36 = vmax.f32 %v795_v0, 0.0 }
 0x1bb   :  { %v1762_v58 = vpop.f32.mrf.mxu1 }
 0x1bc   :  { %v798_v31 = vadd.f32 %v1762_v58, %v2380_v11  ;;  %1835 = vmatprep.mubr.bf16.mxu0 %v1045_v16  ;;  %v992_v2 = vmax.f32 %v787_v53, 0.0 }
 0x1bd   :  { %v789_v59 = vpop.f32.mrf.mxu1  ;;  %1836 = vmatmul.mubr.bf16.gmra.mxu0 %v1046_v26 }
 0x1be   :  { %v790_v56 = vadd.f32 %v2380_v11, %v789_v59  ;;  %v995_v61 = vmax.f32 %v798_v31, 0.0 }
 0x1bf   :  { %v1765_v63 = vpop.f32.mrf.mxu1 }
 0x1c0   :  { %v993_v3 = vmax.f32 %v790_v56, 0.0  ;;  %v1048_v47 = vpack.c.bf16 %v995_v61, %v994_v36  ;;  %v811_v7 = vadd.f32 %v1765_v63, %v2380_v11 }
 0x1c1   :  { %v802_v46 = vpop.f32.mrf.mxu1 }
 0x1c2   :  { %v1047_v6 = vpack.c.bf16 %v993_v3, %v992_v2  ;;  %v803_v10 = vadd.f32 %v2380_v11, %v802_v46  ;;  %v998_v30 = vmax.f32 %v811_v7, 0.0 }
 0x1c3   :  { %v1766_v5 = vpop.f32.mrf.mxu1 }
 0x1c4   :  { %v814_v20 = vadd.f32 %v1766_v5, %v2380_v11  ;;  %1839 = vmatprep.mubr.bf16.mxu0 %v1047_v6  ;;  %v996_v4 = vmax.f32 %v803_v10, 0.0 }
 0x1c5   :  { %v805_v8 = vpop.f32.mrf.mxu1  ;;  %1840 = vmatmul.mubr.bf16.gmra.mxu0 %v1048_v47 }
 0x1c6   :  { %v806_v12 = vadd.f32 %v2380_v11, %v805_v8  ;;  %v999_v13 = vmax.f32 %v814_v20, 0.0 }
 0x1c7   :  { %v1769_v57 = vpop.f32.mrf.mxu1 }
 0x1c8   :  { %v997_v14 = vmax.f32 %v806_v12, 0.0  ;;  %v1050_v19 = vpack.c.bf16 %v999_v13, %v998_v30  ;;  %v827_v24 = vadd.f32 %v1769_v57, %v2380_v11 }
 0x1c9   :  { %v818_v40 = vpop.f32.mrf.mxu1 }
 0x1ca   :  { %v1049_v17 = vpack.c.bf16 %v997_v14, %v996_v4  ;;  %v819_v23 = vadd.f32 %v2380_v11, %v818_v40  ;;  %v1002_v29 = vmax.f32 %v827_v24, 0.0 }
 0x1cb   :  { %v1770_v22 = vpop.f32.mrf.mxu1 }
 0x1cc   :  { %v830_v60 = vadd.f32 %v1770_v22, %v2380_v11  ;;  %1843 = vmatprep.mubr.bf16.mxu0 %v1049_v17  ;;  %v1000_v51 = vmax.f32 %v819_v23, 0.0 }
 0x1cd   :  { %v821_v25 = vpop.f32.mrf.mxu1  ;;  %1844 = vmatmul.mubr.bf16.gmra.mxu0 %v1050_v19 }
 0x1ce   :  { %v822_v15 = vadd.f32 %v2380_v11, %v821_v25  ;;  %v1003_v27 = vmax.f32 %v830_v60, 0.0 }
 0x1cf   :  { %v1773_v28 = vpop.f32.mrf.mxu1 }
 0x1d0   :  { %v1001_v62 = vmax.f32 %v822_v15, 0.0  ;;  %v1052_v35 = vpack.c.bf16 %v1003_v27, %v1002_v29  ;;  %v843_v39 = vadd.f32 %v1773_v28, %v2380_v11 }
 0x1d1   :  { %v834_v33 = vpop.f32.mrf.mxu1 }
 0x1d2   :  { %v1051_v34 = vpack.c.bf16 %v1001_v62, %v1000_v51  ;;  %v835_v38 = vadd.f32 %v2380_v11, %v834_v33  ;;  %v1006_v48 = vmax.f32 %v843_v39, 0.0 }
 0x1d3   :  { %v1774_v37 = vpop.f32.mrf.mxu1 }
 0x1d4   :  { %v846_v50 = vadd.f32 %v1774_v37, %v2380_v11  ;;  %1847 = vmatprep.mubr.bf16.mxu0 %v1051_v34  ;;  %v1004_v44 = vmax.f32 %v835_v38, 0.0 }
 0x1d5   :  { %v837_v9 = vpop.f32.mrf.mxu1  ;;  %1848 = vmatmul.mubr.bf16.gmra.mxu0 %v1052_v35 }
 0x1d6   :  { %v838_v21 = vadd.f32 %v2380_v11, %v837_v9  ;;  %v1007_v41 = vmax.f32 %v846_v50, 0.0 }
 0x1d7   :  { %v1777_v42 = vpop.f32.mrf.mxu1 }
 0x1d8   :  { %v1005_v45 = vmax.f32 %v838_v21, 0.0  ;;  %v1054_v18 = vpack.c.bf16 %v1007_v41, %v1006_v48  ;;  %v859_v54 = vadd.f32 %v1777_v42, %v2380_v11 }
 0x1d9   :  { %v850_v49 = vpop.f32.mrf.mxu1 }
 0x1da   :  { %v1053_v1 = vpack.c.bf16 %v1005_v45, %v1004_v44  ;;  %v851_v32 = vadd.f32 %v2380_v11, %v850_v49  ;;  %v1010_v0 = vmax.f32 %v859_v54, 0.0 }
 0x1db   :  { %v1778_v52 = vpop.f32.mrf.mxu1 }
 0x1dc   :  { %v862_v43 = vadd.f32 %v1778_v52, %v2380_v11  ;;  %1851 = vmatprep.mubr.bf16.mxu0 %v1053_v1  ;;  %v1008_v53 = vmax.f32 %v851_v32, 0.0 }
 0x1dd   :  { %v853_v55 = vpop.f32.mrf.mxu1  ;;  %1852 = vmatmul.mubr.bf16.gmra.mxu0 %v1054_v18 }
 0x1de   :  { %v854_v16 = vadd.f32 %v2380_v11, %v853_v55  ;;  %v1011_v26 = vmax.f32 %v862_v43, 0.0 }
 0x1df   :  { %v1781_v58 = vpop.f32.mrf.mxu1 }
 0x1e0   :  { %v1009_v31 = vmax.f32 %v854_v16, 0.0  ;;  %v1056_v61 = vpack.c.bf16 %v1011_v26, %v1010_v0  ;;  %v875_v36 = vadd.f32 %v1781_v58, %v2380_v11 }
 0x1e1   :  { %v866_v59 = vpop.f32.mrf.mxu1 }
 0x1e2   :  { %v1055_v56 = vpack.c.bf16 %v1009_v31, %v1008_v53  ;;  %v867_v2 = vadd.f32 %v2380_v11, %v866_v59  ;;  %v1014_v7 = vmax.f32 %v875_v36, 0.0 }
 0x1e3   :  { %v1782_v63 = vpop.f32.mrf.mxu1 }
 0x1e4   :  { %v878_v3 = vadd.f32 %v1782_v63, %v2380_v11  ;;  %1855 = vmatprep.mubr.bf16.mxu0 %v1055_v56  ;;  %v1012_v10 = vmax.f32 %v867_v2, 0.0 }
 0x1e5   :  { %v869_v46 = vpop.f32.mrf.mxu1  ;;  %1856 = vmatmul.mubr.bf16.gmra.mxu0 %v1056_v61 }
 0x1e6   :  { %v870_v6 = vadd.f32 %v2380_v11, %v869_v46  ;;  %v1015_v47 = vmax.f32 %v878_v3, 0.0 }
 0x1e7   :  { %v1785_v5 = vpop.f32.mrf.mxu1 }
 0x1e8   :  { %v1013_v20 = vmax.f32 %v870_v6, 0.0  ;;  %v1058_v13 = vpack.c.bf16 %v1015_v47, %v1014_v7  ;;  %v891_v30 = vadd.f32 %v1785_v5, %v2380_v11 }
 0x1e9   :  { %v882_v8 = vpop.f32.mrf.mxu1 }
 0x1ea   :  { %v1057_v12 = vpack.c.bf16 %v1013_v20, %v1012_v10  ;;  %v883_v4 = vadd.f32 %v2380_v11, %v882_v8  ;;  %v1018_v24 = vmax.f32 %v891_v30, 0.0 }
 0x1eb   :  { %v1786_v57 = vpop.f32.mrf.mxu1 }
 0x1ec   :  { %v894_v14 = vadd.f32 %v1786_v57, %v2380_v11  ;;  %1859 = vmatprep.mubr.bf16.mxu0 %v1057_v12  ;;  %v1016_v23 = vmax.f32 %v883_v4, 0.0 }
 0x1ed   :  { %v885_v40 = vpop.f32.mrf.mxu1  ;;  %1860 = vmatmul.mubr.bf16.gmra.mxu0 %v1058_v13 }
 0x1ee   :  { %v886_v17 = vadd.f32 %v2380_v11, %v885_v40  ;;  %v1019_v19 = vmax.f32 %v894_v14, 0.0 }
 0x1ef   :  { %v1789_v22 = vpop.f32.mrf.mxu1 }
 0x1f0   :  { %v1017_v60 = vmax.f32 %v886_v17, 0.0  ;;  %v1060_v27 = vpack.c.bf16 %v1019_v19, %v1018_v24  ;;  %v907_v29 = vadd.f32 %v1789_v22, %v2380_v11 }
 0x1f1   :  { %v898_v25 = vpop.f32.mrf.mxu1 }
 0x1f2   :  { %v1059_v15 = vpack.c.bf16 %v1017_v60, %v1016_v23  ;;  %v899_v51 = vadd.f32 %v2380_v11, %v898_v25  ;;  %v1022_v39 = vmax.f32 %v907_v29, 0.0  ;;  %v2448_v29 = vld [vmem:[%s2708_s6] ss:$0 sm:$0xff] }
 0x1f3   :  { %v1790_v28 = vpop.f32.mrf.mxu1 }
 0x1f4   :  { %v910_v62 = vadd.f32 %v1790_v28, %v2380_v11  ;;  %1863 = vmatprep.mubr.bf16.mxu0 %v1059_v15  ;;  %v1020_v38 = vmax.f32 %v899_v51, 0.0 }
 0x1f5   :  { %v901_v33 = vpop.f32.mrf.mxu1  ;;  %1864 = vmatmul.mubr.bf16.gmra.mxu0 %v1060_v27 }
 0x1f6   :  { %v902_v34 = vadd.f32 %v2380_v11, %v901_v33  ;;  %v1023_v35 = vmax.f32 %v910_v62, 0.0 }
 0x1f7   :  { %v1793_v37 = vpop.f32.mrf.mxu1 }
 0x1f8   :  { %v1021_v50 = vmax.f32 %v902_v34, 0.0  ;;  %v1062_v41 = vpack.c.bf16 %v1023_v35, %v1022_v39  ;;  %v923_v48 = vadd.f32 %v1793_v37, %v2380_v11 }
 0x1f9   :  { %v914_v9 = vpop.f32.mrf.mxu1 }
 0x1fa   :  { %v1061_v21 = vpack.c.bf16 %v1021_v50, %v1020_v38  ;;  %v915_v44 = vadd.f32 %v2380_v11, %v914_v9  ;;  %v1026_v54 = vmax.f32 %v923_v48, 0.0 }
 0x1fb   :  { %v1794_v42 = vpop.f32.mrf.mxu1 }
 0x1fc   :  { %v926_v45 = vadd.f32 %v1794_v42, %v2380_v11  ;;  %1867 = vmatprep.mubr.bf16.mxu0 %v1061_v21  ;;  %v1024_v32 = vmax.f32 %v915_v44, 0.0 }
 0x1fd   :  { %v917_v49 = vpop.f32.mrf.mxu1  ;;  %1868 = vmatmul.mubr.bf16.gmra.mxu0 %v1062_v41 }
 0x1fe   :  { %v918_v1 = vadd.f32 %v2380_v11, %v917_v49  ;;  %v1027_v18 = vmax.f32 %v926_v45, 0.0 }
 0x1ff   :  { %v1797_v52 = vpop.f32.mrf.mxu1 }
 0x200   :  { %v1025_v43 = vmax.f32 %v918_v1, 0.0  ;;  %v1064_v26 = vpack.c.bf16 %v1027_v18, %v1026_v54  ;;  %v939_v0 = vadd.f32 %v1797_v52, %v2380_v11 }
 0x201   :  { %v930_v55 = vpop.f32.mrf.mxu1 }
 0x202   :  { %v1063_v16 = vpack.c.bf16 %v1025_v43, %v1024_v32  ;;  %v931_v53 = vadd.f32 %v2380_v11, %v930_v55  ;;  %v1030_v36 = vmax.f32 %v939_v0, 0.0 }
 0x203   :  { %v1798_v58 = vpop.f32.mrf.mxu1 }
 0x204   :  { %v942_v31 = vadd.f32 %v1798_v58, %v2380_v11  ;;  %1871 = vmatprep.mubr.bf16.mxu0 %v1063_v16  ;;  %v1028_v2 = vmax.f32 %v931_v53, 0.0 }
 0x205   :  { %v933_v59 = vpop.f32.mrf.mxu1  ;;  %1872 = vmatmul.mubr.bf16.gmra.mxu0 %v1064_v26 }
 0x206   :  { %v934_v56 = vadd.f32 %v2380_v11, %v933_v59  ;;  %v1031_v61 = vmax.f32 %v942_v31, 0.0 }
 0x207   :  { %v1801_v63 = vpop.f32.mrf.mxu1 }
 0x208   :  { %v1029_v3 = vmax.f32 %v934_v56, 0.0  ;;  %v1066_v47 = vpack.c.bf16 %v1031_v61, %v1030_v36  ;;  %v955_v7 = vadd.f32 %v1801_v63, %v2380_v11 }
 0x209   :  { %v946_v46 = vpop.f32.mrf.mxu1 }
 0x20a   :  { %v1065_v6 = vpack.c.bf16 %v1029_v3, %v1028_v2  ;;  %v947_v10 = vadd.f32 %v2380_v11, %v946_v46  ;;  %v1034_v30 = vmax.f32 %v955_v7, 0.0 }
 0x20b   :  { %v1802_v5 = vpop.f32.mrf.mxu1 }
 0x20c   :  { %v958_v20 = vadd.f32 %v1802_v5, %v2380_v11  ;;  %1875 = vmatprep.mubr.bf16.mxu0 %v1065_v6  ;;  %v1032_v4 = vmax.f32 %v947_v10, 0.0 }
 0x20d   :  { %v949_v8 = vpop.f32.mrf.mxu1  ;;  %1876 = vmatmul.mubr.bf16.gmra.mxu0 %v1066_v47 }
 0x20e   :  { %v950_v12 = vadd.f32 %v2380_v11, %v949_v8  ;;  %v1035_v13 = vmax.f32 %v958_v20, 0.0 }
 0x20f   :  { %v1805_v57 = vpop.f32.mrf.mxu1 }
 0x210   :  { %v1033_v14 = vmax.f32 %v950_v12, 0.0  ;;  %v1068_v19 = vpack.c.bf16 %v1035_v13, %v1034_v30  ;;  %v971_v22 = vadd.f32 %v1805_v57, %v2380_v11 }
 0x211   :  { %v962_v40 = vpop.f32.mrf.mxu1 }
 0x212   :  { %v1067_v17 = vpack.c.bf16 %v1033_v14, %v1032_v4  ;;  %v963_v60 = vadd.f32 %v2380_v11, %v962_v40  ;;  %v1038_v15 = vmax.f32 %v971_v22, 0.0 }
 0x213   :  { %v1806_v23 = vpop.f32.mrf.mxu1 }
 0x214   :  { %1879 = vmatprep.mubr.bf16.mxu0 %v1067_v17  ;;  %v1036_v27 = vmax.f32 %v963_v60, 0.0  ;;  %v1070_v62 = vpack.c.bf16 %v1038_v15, %v1038_v15 }
 0x215   :  { %v965_v24 = vpop.f32.mrf.mxu1  ;;  %1880 = vmatmul.mubr.bf16.gmra.mxu0 %v1068_v19 }
 0x216   :  { %v966_v25 = vadd.f32 %v2380_v11, %v965_v24 }
 0x218   :  { %v1037_v28 = vmax.f32 %v966_v25, 0.0 }
 0x21a   :  { %v1069_v51 = vpack.c.bf16 %v1037_v28, %v1036_v27 }
 0x21c   :  { %1883 = vmatprep.mubr.bf16.mxu0 %v1069_v51 }
 0x21d   :  { %1884 = vmatmul.mubr.bf16.gmra.mxu0 %v1070_v62 }
 0x265   :  { %v1825_v33 = vpop.f32.mrf.mxu0 }
 0x266   :  { %v1185_v34 = vadd.f32 %v1825_v33, %v2448_v29 }
 0x267   :  { %v1176_v35 = vpop.f32.mrf.mxu0 }
 0x268   :  { %1432 = vst [vmem:[%s2709_s7 + $0x10] sm:$0xff] %v1185_v34  ;;  %v1177_v11 = vadd.f32 %v2448_v29, %v1176_v35 }
 0x269   :  { %v1826_v37 = vpop.f32.mrf.mxu0 }
 0x26a   :  { %1430 = vst [vmem:[%s2709_s7] sm:$0xff] %v1177_v11  ;;  %v1188_v38 = vadd.f32 %v1826_v37, %v2448_v29 }
 0x26b   :  { %v1179_v50 = vpop.f32.mrf.mxu0 }
 0x26c   :  { %1433 = vst [vmem:[%s2709_s7 + $0x18] sm:$0xff] %v1188_v38  ;;  %v1180_v39 = vadd.f32 %v2448_v29, %v1179_v50 }
 0x26d   :  { %v1829_v9 = vpop.f32.mrf.mxu0 }
 0x26e   :  { %1431 = vst [vmem:[%s2709_s7 + $0x8] sm:$0xff] %v1180_v39  ;;  %v1201_v21 = vadd.f32 %v1829_v9, %v2448_v29 }
 0x26f   :  { %v1192_v41 = vpop.f32.mrf.mxu0 }
 0x270   :  { %1436 = vst [vmem:[%s2709_s7 + $0x30] sm:$0xff] %v1201_v21  ;;  %v1193_v42 = vadd.f32 %v2448_v29, %v1192_v41 }
 0x271   :  { %v1830_v44 = vpop.f32.mrf.mxu0 }
 0x272   :  { %1434 = vst [vmem:[%s2709_s7 + $0x20] sm:$0xff] %v1193_v42  ;;  %v1204_v45 = vadd.f32 %v1830_v44, %v2448_v29 }
 0x273   :  { %v1195_v48 = vpop.f32.mrf.mxu0 }
 0x274   :  { %1437 = vst [vmem:[%s2709_s7 + $0x38] sm:$0xff] %v1204_v45  ;;  %v1196_v49 = vadd.f32 %v2448_v29, %v1195_v48 }
 0x275   :  { %v1833_v1 = vpop.f32.mrf.mxu0 }
 0x276   :  { %1435 = vst [vmem:[%s2709_s7 + $0x28] sm:$0xff] %v1196_v49  ;;  %v1217_v18 = vadd.f32 %v1833_v1, %v2448_v29 }
 0x277   :  { %v1208_v52 = vpop.f32.mrf.mxu0 }
 0x278   :  { %1440 = vst [vmem:[%s2709_s7 + $0x50] sm:$0xff] %v1217_v18  ;;  %v1209_v32 = vadd.f32 %v2448_v29, %v1208_v52 }
 0x279   :  { %v1834_v43 = vpop.f32.mrf.mxu0 }
 0x27a   :  { %1438 = vst [vmem:[%s2709_s7 + $0x40] sm:$0xff] %v1209_v32  ;;  %v1220_v54 = vadd.f32 %v1834_v43, %v2448_v29 }
 0x27b   :  { %v1211_v55 = vpop.f32.mrf.mxu0 }
 0x27c   :  { %1441 = vst [vmem:[%s2709_s7 + $0x58] sm:$0xff] %v1220_v54  ;;  %v1212_v16 = vadd.f32 %v2448_v29, %v1211_v55 }
 0x27d   :  { %v1837_v26 = vpop.f32.mrf.mxu0 }
 0x27e   :  { %1439 = vst [vmem:[%s2709_s7 + $0x48] sm:$0xff] %v1212_v16  ;;  %v1233_v58 = vadd.f32 %v1837_v26, %v2448_v29 }
 0x27f   :  { %v1224_v53 = vpop.f32.mrf.mxu0 }
 0x280   :  { %1444 = vst [vmem:[%s2709_s7 + $0x70] sm:$0xff] %v1233_v58  ;;  %v1225_v31 = vadd.f32 %v2448_v29, %v1224_v53 }
 0x281   :  { %v1838_v0 = vpop.f32.mrf.mxu0 }
 0x282   :  { %1442 = vst [vmem:[%s2709_s7 + $0x60] sm:$0xff] %v1225_v31  ;;  %v1236_v59 = vadd.f32 %v1838_v0, %v2448_v29 }
 0x283   :  { %v1227_v56 = vpop.f32.mrf.mxu0 }
 0x284   :  { %1445 = vst [vmem:[%s2709_s7 + $0x78] sm:$0xff] %v1236_v59  ;;  %v1228_v61 = vadd.f32 %v2448_v29, %v1227_v56 }
 0x285   :  { %v1841_v63 = vpop.f32.mrf.mxu0 }
 0x286   :  { %1443 = vst [vmem:[%s2709_s7 + $0x68] sm:$0xff] %v1228_v61  ;;  %v1249_v2 = vadd.f32 %v1841_v63, %v2448_v29 }
 0x287   :  { %v1240_v3 = vpop.f32.mrf.mxu0 }
 0x288   :  { %1448 = vst [vmem:[%s2709_s7 + $0x90] sm:$0xff] %v1249_v2  ;;  %v1241_v36 = vadd.f32 %v2448_v29, %v1240_v3 }
 0x289   :  { %v1842_v46 = vpop.f32.mrf.mxu0 }
 0x28a   :  { %1446 = vst [vmem:[%s2709_s7 + $0x80] sm:$0xff] %v1241_v36  ;;  %v1252_v6 = vadd.f32 %v1842_v46, %v2448_v29 }
 0x28b   :  { %v1243_v47 = vpop.f32.mrf.mxu0 }
 0x28c   :  { %1449 = vst [vmem:[%s2709_s7 + $0x98] sm:$0xff] %v1252_v6  ;;  %v1244_v5 = vadd.f32 %v2448_v29, %v1243_v47 }
 0x28d   :  { %v1845_v10 = vpop.f32.mrf.mxu0 }
 0x28e   :  { %1447 = vst [vmem:[%s2709_s7 + $0x88] sm:$0xff] %v1244_v5  ;;  %v1265_v20 = vadd.f32 %v1845_v10, %v2448_v29 }
 0x28f   :  { %v1256_v7 = vpop.f32.mrf.mxu0 }
 0x290   :  { %1452 = vst [vmem:[%s2709_s7 + $0xb0] sm:$0xff] %v1265_v20  ;;  %v1257_v8 = vadd.f32 %v2448_v29, %v1256_v7 }
 0x291   :  { %v1846_v12 = vpop.f32.mrf.mxu0 }
 0x292   :  { %1450 = vst [vmem:[%s2709_s7 + $0xa0] sm:$0xff] %v1257_v8  ;;  %v1268_v13 = vadd.f32 %v1846_v12, %v2448_v29 }
 0x293   :  { %v1259_v57 = vpop.f32.mrf.mxu0 }
 0x294   :  { %1453 = vst [vmem:[%s2709_s7 + $0xb8] sm:$0xff] %v1268_v13  ;;  %v1260_v4 = vadd.f32 %v2448_v29, %v1259_v57 }
 0x295   :  { %v1849_v14 = vpop.f32.mrf.mxu0 }
 0x296   :  { %1451 = vst [vmem:[%s2709_s7 + $0xa8] sm:$0xff] %v1260_v4  ;;  %v1281_v30 = vadd.f32 %v1849_v14, %v2448_v29 }
 0x297   :  { %v1272_v40 = vpop.f32.mrf.mxu0 }
 0x298   :  { %1456 = vst [vmem:[%s2709_s7 + $0xd0] sm:$0xff] %v1281_v30  ;;  %v1273_v17 = vadd.f32 %v2448_v29, %v1272_v40 }
 0x299   :  { %v1850_v19 = vpop.f32.mrf.mxu0 }
 0x29a   :  { %1454 = vst [vmem:[%s2709_s7 + $0xc0] sm:$0xff] %v1273_v17  ;;  %v1284_v22 = vadd.f32 %v1850_v19, %v2448_v29 }
 0x29b   :  { %v1275_v23 = vpop.f32.mrf.mxu0 }
 0x29c   :  { %1457 = vst [vmem:[%s2709_s7 + $0xd8] sm:$0xff] %v1284_v22  ;;  %v1276_v60 = vadd.f32 %v2448_v29, %v1275_v23 }
 0x29d   :  { %v1853_v24 = vpop.f32.mrf.mxu0 }
 0x29e   :  { %1455 = vst [vmem:[%s2709_s7 + $0xc8] sm:$0xff] %v1276_v60  ;;  %v1297_v25 = vadd.f32 %v1853_v24, %v2448_v29 }
 0x29f   :  { %v1288_v15 = vpop.f32.mrf.mxu0 }
 0x2a0   :  { %1460 = vst [vmem:[%s2709_s7 + $0xf0] sm:$0xff] %v1297_v25  ;;  %v1289_v27 = vadd.f32 %v2448_v29, %v1288_v15 }
 0x2a1   :  { %v1854_v28 = vpop.f32.mrf.mxu0 }
 0x2a2   :  { %1458 = vst [vmem:[%s2709_s7 + $0xe0] sm:$0xff] %v1289_v27  ;;  %v1300_v51 = vadd.f32 %v1854_v28, %v2448_v29 }
 0x2a3   :  { %v1291_v62 = vpop.f32.mrf.mxu0 }
 0x2a4   :  { %1461 = vst [vmem:[%s2709_s7 + $0xf8] sm:$0xff] %v1300_v51  ;;  %v1292_v33 = vadd.f32 %v2448_v29, %v1291_v62 }
 0x2a5   :  { %v1857_v34 = vpop.f32.mrf.mxu0 }
 0x2a6   :  { %1459 = vst [vmem:[%s2709_s7 + $0xe8] sm:$0xff] %v1292_v33  ;;  %v1313_v35 = vadd.f32 %v1857_v34, %v2448_v29 }
 0x2a7   :  { %v1304_v11 = vpop.f32.mrf.mxu0 }
 0x2a8   :  { %1464 = vst [vmem:[%s2709_s7 + $0x110] sm:$0xff] %v1313_v35  ;;  %v1305_v37 = vadd.f32 %v2448_v29, %v1304_v11 }
 0x2a9   :  { %v1858_v38 = vpop.f32.mrf.mxu0 }
 0x2aa   :  { %1462 = vst [vmem:[%s2709_s7 + $0x100] sm:$0xff] %v1305_v37  ;;  %v1316_v50 = vadd.f32 %v1858_v38, %v2448_v29 }
 0x2ab   :  { %v1307_v39 = vpop.f32.mrf.mxu0 }
 0x2ac   :  { %1465 = vst [vmem:[%s2709_s7 + $0x118] sm:$0xff] %v1316_v50  ;;  %v1308_v9 = vadd.f32 %v2448_v29, %v1307_v39 }
 0x2ad   :  { %v1861_v21 = vpop.f32.mrf.mxu0 }
 0x2ae   :  { %1463 = vst [vmem:[%s2709_s7 + $0x108] sm:$0xff] %v1308_v9  ;;  %v1329_v41 = vadd.f32 %v1861_v21, %v2448_v29 }
 0x2af   :  { %v1320_v42 = vpop.f32.mrf.mxu0 }
 0x2b0   :  { %1468 = vst [vmem:[%s2709_s7 + $0x130] sm:$0xff] %v1329_v41  ;;  %v1321_v44 = vadd.f32 %v2448_v29, %v1320_v42 }
 0x2b1   :  { %v1862_v45 = vpop.f32.mrf.mxu0 }
 0x2b2   :  { %1466 = vst [vmem:[%s2709_s7 + $0x120] sm:$0xff] %v1321_v44  ;;  %v1332_v48 = vadd.f32 %v1862_v45, %v2448_v29 }
 0x2b3   :  { %v1323_v49 = vpop.f32.mrf.mxu0 }
 0x2b4   :  { %1469 = vst [vmem:[%s2709_s7 + $0x138] sm:$0xff] %v1332_v48  ;;  %v1324_v1 = vadd.f32 %v2448_v29, %v1323_v49 }
 0x2b5   :  { %v1865_v18 = vpop.f32.mrf.mxu0 }
 0x2b6   :  { %1467 = vst [vmem:[%s2709_s7 + $0x128] sm:$0xff] %v1324_v1  ;;  %v1345_v52 = vadd.f32 %v1865_v18, %v2448_v29 }
 0x2b7   :  { %v1336_v32 = vpop.f32.mrf.mxu0 }
 0x2b8   :  { %1472 = vst [vmem:[%s2709_s7 + $0x150] sm:$0xff] %v1345_v52  ;;  %v1337_v43 = vadd.f32 %v2448_v29, %v1336_v32 }
 0x2b9   :  { %v1866_v54 = vpop.f32.mrf.mxu0 }
 0x2ba   :  { %1470 = vst [vmem:[%s2709_s7 + $0x140] sm:$0xff] %v1337_v43  ;;  %v1348_v55 = vadd.f32 %v1866_v54, %v2448_v29 }
 0x2bb   :  { %v1339_v16 = vpop.f32.mrf.mxu0 }
 0x2bc   :  { %1473 = vst [vmem:[%s2709_s7 + $0x158] sm:$0xff] %v1348_v55  ;;  %v1340_v26 = vadd.f32 %v2448_v29, %v1339_v16 }
 0x2bd   :  { %v1869_v58 = vpop.f32.mrf.mxu0 }
 0x2be   :  { %1471 = vst [vmem:[%s2709_s7 + $0x148] sm:$0xff] %v1340_v26  ;;  %v1361_v53 = vadd.f32 %v1869_v58, %v2448_v29 }
 0x2bf   :  { %v1352_v31 = vpop.f32.mrf.mxu0 }
 0x2c0   :  { %1476 = vst [vmem:[%s2709_s7 + $0x170] sm:$0xff] %v1361_v53  ;;  %v1353_v0 = vadd.f32 %v2448_v29, %v1352_v31 }
 0x2c1   :  { %v1870_v59 = vpop.f32.mrf.mxu0 }
 0x2c2   :  { %1474 = vst [vmem:[%s2709_s7 + $0x160] sm:$0xff] %v1353_v0  ;;  %v1364_v56 = vadd.f32 %v1870_v59, %v2448_v29 }
 0x2c3   :  { %v1355_v61 = vpop.f32.mrf.mxu0 }
 0x2c4   :  { %1477 = vst [vmem:[%s2709_s7 + $0x178] sm:$0xff] %v1364_v56  ;;  %v1356_v63 = vadd.f32 %v2448_v29, %v1355_v61 }
 0x2c5   :  { %v1873_v2 = vpop.f32.mrf.mxu0 }
 0x2c6   :  { %1475 = vst [vmem:[%s2709_s7 + $0x168] sm:$0xff] %v1356_v63  ;;  %v1377_v3 = vadd.f32 %v1873_v2, %v2448_v29 }
 0x2c7   :  { %v1368_v36 = vpop.f32.mrf.mxu0 }
 0x2c8   :  { %1480 = vst [vmem:[%s2709_s7 + $0x190] sm:$0xff] %v1377_v3  ;;  %v1369_v46 = vadd.f32 %v2448_v29, %v1368_v36 }
 0x2c9   :  { %v1874_v6 = vpop.f32.mrf.mxu0 }
 0x2ca   :  { %1478 = vst [vmem:[%s2709_s7 + $0x180] sm:$0xff] %v1369_v46  ;;  %v1380_v47 = vadd.f32 %v1874_v6, %v2448_v29 }
 0x2cb   :  { %v1371_v5 = vpop.f32.mrf.mxu0 }
 0x2cc   :  { %1481 = vst [vmem:[%s2709_s7 + $0x198] sm:$0xff] %v1380_v47  ;;  %v1372_v10 = vadd.f32 %v2448_v29, %v1371_v5 }
 0x2cd   :  { %v1877_v20 = vpop.f32.mrf.mxu0 }
 0x2ce   :  { %1479 = vst [vmem:[%s2709_s7 + $0x188] sm:$0xff] %v1372_v10  ;;  %v1393_v7 = vadd.f32 %v1877_v20, %v2448_v29 }
 0x2cf   :  { %v1384_v8 = vpop.f32.mrf.mxu0 }
 0x2d0   :  { %1484 = vst [vmem:[%s2709_s7 + $0x1b0] sm:$0xff] %v1393_v7  ;;  %v1385_v12 = vadd.f32 %v2448_v29, %v1384_v8 }
 0x2d1   :  { %v1878_v13 = vpop.f32.mrf.mxu0 }
 0x2d2   :  { %1482 = vst [vmem:[%s2709_s7 + $0x1a0] sm:$0xff] %v1385_v12  ;;  %v1396_v57 = vadd.f32 %v1878_v13, %v2448_v29 }
 0x2d3   :  { %v1387_v4 = vpop.f32.mrf.mxu0 }
 0x2d4   :  { %1485 = vst [vmem:[%s2709_s7 + $0x1b8] sm:$0xff] %v1396_v57  ;;  %v1388_v14 = vadd.f32 %v2448_v29, %v1387_v4 }
 0x2d5   :  { %v1881_v30 = vpop.f32.mrf.mxu0 }
 0x2d6   :  { %1483 = vst [vmem:[%s2709_s7 + $0x1a8] sm:$0xff] %v1388_v14  ;;  %v1409_v40 = vadd.f32 %v1881_v30, %v2448_v29 }
 0x2d7   :  { %v1400_v17 = vpop.f32.mrf.mxu0 }
 0x2d8   :  { %1488 = vst [vmem:[%s2709_s7 + $0x1d0] sm:$0xff] %v1409_v40  ;;  %v1401_v19 = vadd.f32 %v2448_v29, %v1400_v17 }
 0x2d9   :  { %v1882_v22 = vpop.f32.mrf.mxu0 }
 0x2da   :  { %1486 = vst [vmem:[%s2709_s7 + $0x1c0] sm:$0xff] %v1401_v19  ;;  %v1412_v23 = vadd.f32 %v1882_v22, %v2448_v29 }
 0x2db   :  { %v1403_v60 = vpop.f32.mrf.mxu0 }
 0x2dc   :  { %1489 = vst [vmem:[%s2709_s7 + $0x1d8] sm:$0xff] %v1412_v23  ;;  %v1404_v24 = vadd.f32 %v2448_v29, %v1403_v60 }
 0x2dd   :  { %v1885_v25 = vpop.f32.mrf.mxu0 }
 0x2de   :  { %1487 = vst [vmem:[%s2709_s7 + $0x1c8] sm:$0xff] %v1404_v24  ;;  %v1425_v15 = vadd.f32 %v1885_v25, %v2448_v29 }
 0x2df   :  { %v1416_v27 = vpop.f32.mrf.mxu0 }
 0x2e0   :  { %1492 = vst [vmem:[%s2709_s7 + $0x1f0] sm:$0xff] %v1425_v15  ;;  %v1417_v28 = vadd.f32 %v2448_v29, %v1416_v27 }
 0x2e1   :  { %v1886_v51 = vpop.f32.mrf.mxu0 }
 0x2e2   :  { %1490 = vst [vmem:[%s2709_s7 + $0x1e0] sm:$0xff] %v1417_v28 }
 0x2e3   :  { %v1419_v62 = vpop.f32.mrf.mxu0 }
 0x2e4   :  { %v1420_v33 = vadd.f32 %v2448_v29, %v1419_v62 }
 0x2e6   :  { %1491 = vst [vmem:[%s2709_s7 + $0x1e8] sm:$0xff] %v1420_v33 }

</bundles_post_ra>
